<compile_context>
chip_gen: v7x
topology: tpu7x:2x2x1
jax: 0.10.0
libtpu: 0.0.40
codegen_flags: <defaults>
</compile_context>

<pallas_src>
import functools

import jax
import jax.numpy as jnp
from jax import lax
from jax.experimental import pallas as pl
from jax.experimental.pallas import tpu as pltpu

K = 5          # kernel_size
PAD = 2        # ConvTranspose2d padding
EPS = 1e-5     # BatchNorm2d eps
LEAK = 0.1     # nn.LeakyReLU(leak) with the module's leak=0.1 default


def _round_up(x, m):
    return ((x + m - 1) // m) * m


def _cdiv(a, b):
    return -(-a // b)


# ----------------------------------------------------------------------------------
# Kernels
# ----------------------------------------------------------------------------------
def conv_act_kernel(p_ref, m_ref, bias_ref, y_ref, sum_ref, sq_ref, *, leak):
    # p_ref:    (TR, Kc_pad)     bf16 row-patches (one row per output image row)
    # m_ref:    (Kc_pad, L_pad)  bf16 structured weight slab (resident across the grid)
    # bias_ref: (1, L_pad)       f32  per-channel bias tiled over W
    # y_ref:    (TR, L_pad)      bf16 pre-BN activations (lane-dense: W*Cout lanes)
    # sum_ref:  (1, 1, L_pad)    f32  per-tile BN partial sum   (from the f32 accumulator)
    # sq_ref:   (1, 1, L_pad)    f32  per-tile BN partial sum-of-squares
    y = jnp.dot(p_ref[...], m_ref[...], preferred_element_type=jnp.float32)
    y = y + bias_ref[...]                       # conv-transpose bias
    y = jnp.where(y > 0, y, leak * y)           # Dropout2d == identity (eval), LeakyReLU
    y_ref[...] = y.astype(y_ref.dtype)          # bf16 intermediate store (halves HBM traffic)
    sum_ref[...] = jnp.sum(y, axis=0).reshape(1, 1, -1)
    sq_ref[...] = jnp.sum(y * y, axis=0).reshape(1, 1, -1)


def bn_apply_kernel(y_ref, scale_ref, shift_ref, o_ref):
    # Fused BN affine: y*(gamma*inv_std) + (beta - mean*gamma*inv_std), lane-dense elementwise.
    y = y_ref[...].astype(jnp.float32)
    o_ref[...] = (y * scale_ref[...] + shift_ref[...]).astype(o_ref.dtype)


# ----------------------------------------------------------------------------------
# Wrapper
# ----------------------------------------------------------------------------------
def prepare_weights(w, b, W, *, mxu_dtype=jnp.bfloat16):
    """Precompute the structured weight slab + bias rows (depends only on (w, b, W)).

    Cache the returned dict per weight set to amortize this to zero at inference time.
    """
    Cin, Cout = w.shape[0], w.shape[1]
    conv_pad = K - 1 - PAD                        # = 2
    Wp = W + 2 * conv_pad
    L = W * Cout
    L_pad = _round_up(L, 128)
    Kc = K * Wp * Cin
    Kc_pad = _round_up(Kc, 128)

    # Structured weight slab: M[(kh, p, cin), (w, cout)] = wflip[kh, p-w, cin, cout] (0 outside)
    w_flip = jnp.transpose(jnp.flip(w, axis=(2, 3)), (2, 3, 0, 1)).astype(jnp.float32)
    sel = (jnp.arange(Wp)[None, :, None]
           == jnp.arange(W)[None, None, :] + jnp.arange(K)[:, None, None]).astype(jnp.float32)
    M = jnp.einsum('kpw,hkio->hpiwo', sel, w_flip).reshape(Kc, L)
    M = jnp.pad(M, ((0, Kc_pad - Kc), (0, L_pad - L))).astype(mxu_dtype)

    bias_lane = jnp.tile(b.astype(jnp.float32), W)                          # (L,)
    bias_row = jnp.pad(bias_lane, (0, L_pad - L)).reshape(1, L_pad)

    return dict(M=M, bias_row=bias_row, bias_lane=bias_lane,
                Cin=Cin, Cout=Cout, W=W, Wp=Wp, conv_pad=conv_pad,
                L=L, L_pad=L_pad, Kc=Kc, Kc_pad=Kc_pad)


def decoding_block(x_nchw, w, b, gamma, beta, *, prepared=None, leak=LEAK,
                   block_rows=1024, mxu_dtype=jnp.bfloat16, channels_last=False):
    """x_nchw: (N, Cin, H, W) f32.  w: PyTorch ConvTranspose2d weight (Cin, Cout, K, K)."""
    N, Cin, H, W = x_nchw.shape
    if prepared is None:
        prepared = prepare_weights(w, b, W, mxu_dtype=mxu_dtype)
    assert prepared["Cin"] == Cin and prepared["W"] == W
    Cout = prepared["Cout"]
    conv_pad, Wp = prepared["conv_pad"], prepared["Wp"]
    L, L_pad, Kc, Kc_pad = prepared["L"], prepared["L_pad"], prepared["Kc"], prepared["Kc_pad"]
    M, bias_row, bias_lane = prepared["M"], prepared["bias_row"], prepared["bias_lane"]
    itemsize = jnp.dtype(mxu_dtype).itemsize

    # ---- row-block tiling ------------------------------------------------------------
    R = N * H                                           # number of output image rows
    sub = 16 if mxu_dtype == jnp.bfloat16 else 8        # sublane multiple for packed dtype
    R_sub = _round_up(R, sub)
    # Cap TR so the "parallel" grid keeps >= 2 steps when possible (dual-TC on v7x).
    tr_cap = _round_up(_cdiv(R_sub, 2), sub) if R_sub >= 2 * sub else R_sub
    TR = max(sub, min(_round_up(block_rows, sub), tr_cap))
    R_pad = _round_up(R, TR)
    n_tiles = R_pad // TR
    # Kernel B is pure elementwise: use an even larger row block.
    TR_B = TR
    while (R_pad % (TR_B * 2) == 0) and (R_pad // (TR_B * 2) >= 2) and (TR_B * 2 <= 4096):
        TR_B *= 2
    n_tiles_b = R_pad // TR_B

    # ---- VMEM budget guard (v7x: 64 MiB physical; v5e scoped default: 16 MiB) ---------
    slab_bytes = Kc_pad * L_pad * itemsize
    if 2 * slab_bytes > 24 * 2**20:
        raise ValueError("structured weight slab too large for resident VMEM; tile the K axis")
    vmem_a = (2 * TR * Kc_pad * itemsize            # P tile, double-buffered
              + 2 * slab_bytes                      # weight slab (budgeted x2 conservatively)
              + 2 * L_pad * 4                       # bias row
              + 2 * TR * L_pad * itemsize           # bf16 y output tile, double-buffered
              + 4 * L_pad * 4)                      # stats rows
    vmem_b = 2 * TR_B * L_pad * (itemsize + 4) + 4 * L_pad * 4
    vmem_limit = int(min(48 * 2**20, max(16 * 2**20, 2 * max(vmem_a, vmem_b))))

    # ---- wrapper-side layout prep (bf16 staging, no f32 temporaries) ------------------
    x = jnp.transpose(x_nchw, (0, 2, 3, 1)).astype(mxu_dtype)               # NHWC bf16
    xpad = jnp.pad(x, ((0, 0), (conv_pad, conv_pad), (conv_pad, conv_pad), (0, 0)))
    # Row-patches: P[n*H + h, (kh, p, cin)] = xpad[n, h + kh, p, cin]
    P = jnp.stack([xpad[:, kh:kh + H] for kh in range(K)], axis=2)          # (N,H,K,Wp,Cin)
    P = P.reshape(R, Kc)
    P = jnp.pad(P, ((0, R_pad - R), (0, Kc_pad - Kc)))                      # stays bf16

    # ---- kernel A: conv(+bias) + LeakyReLU + per-tile BN partial stats ----------------
    kern_a = functools.partial(conv_act_kernel, leak=leak)
    y_flat, sums, sqs = pl.pallas_call(
        kern_a,
        out_shape=(jax.ShapeDtypeStruct((R_pad, L_pad), mxu_dtype),
                   jax.ShapeDtypeStruct((n_tiles, 1, L_pad), jnp.float32),
                   jax.ShapeDtypeStruct((n_tiles, 1, L_pad), jnp.float32)),
        grid=(n_tiles,),
        in_specs=[pl.BlockSpec((TR, Kc_pad), lambda i: (i, 0)),
                  pl.BlockSpec((Kc_pad, L_pad), lambda i: (0, 0)),
                  pl.BlockSpec((1, L_pad), lambda i: (0, 0))],
        out_specs=(pl.BlockSpec((TR, L_pad), lambda i: (i, 0)),
                   pl.BlockSpec((1, 1, L_pad), lambda i: (i, 0, 0)),
                   pl.BlockSpec((1, 1, L_pad), lambda i: (i, 0, 0))),
        compiler_params=pltpu.CompilerParams(
            dimension_semantics=("parallel",), vmem_limit_bytes=vmem_limit),
    )(P, M, bias_row)

    # ---- tiny per-channel reduction + fused BN affine coefficients (XLA, O(Cout)) -----
    # Padded rows of P are zero, so each contributes exactly leakyrelu(bias) per lane to the
    # stats; subtract that in the wrapper instead of masking inside the kernel.
    pad_rows = jnp.float32(R_pad - R)
    lb = jnp.where(bias_lane > 0, bias_lane, jnp.float32(leak) * bias_lane)
    count = jnp.float32(N * H * W)
    s = sums[:, 0, :L].sum(0) - pad_rows * lb
    ss = sqs[:, 0, :L].sum(0) - pad_rows * lb * lb
    s_c = s.reshape(W, Cout).sum(0)
    ss_c = ss.reshape(W, Cout).sum(0)
    mean = s_c / count
    # NOTE: E[x^2]-E[x]^2 in f32; fine at these scales, consider Welford merge at very large N*H*W.
    var = ss_c / count - mean * mean              # biased variance (BN training forward)
    scale = gamma.astype(jnp.float32) * lax.rsqrt(var + EPS)
    shift = beta.astype(jnp.float32) - mean * scale
    scale_row = jnp.pad(jnp.tile(scale, W), (0, L_pad - L)).reshape(1, L_pad)
    shift_row = jnp.pad(jnp.tile(shift, W), (0, L_pad - L)).reshape(1, L_pad)

    # ---- kernel B: apply BN affine (second pass), lane-dense elementwise ---------------
    out_flat = pl.pallas_call(
        bn_apply_kernel,
        out_shape=jax.ShapeDtypeStruct((R_pad, L_pad), jnp.float32),
        grid=(n_tiles_b,),
        in_specs=[pl.BlockSpec((TR_B, L_pad), lambda i: (i, 0)),
                  pl.BlockSpec((1, L_pad), lambda i: (0, 0)),
                  pl.BlockSpec((1, L_pad), lambda i: (0, 0))],
        out_specs=pl.BlockSpec((TR_B, L_pad), lambda i: (i, 0)),
        compiler_params=pltpu.CompilerParams(
            dimension_semantics=("parallel",), vmem_limit_bytes=vmem_limit),
    )(y_flat, scale_row, shift_row)

    out = out_flat[:R, :L].reshape(N, H, W, Cout)
    if channels_last:
        return out                                  # NHWC: skips an extra HBM round trip
    return jnp.transpose(out, (0, 3, 1, 2))          # NCHW, matching the PyTorch module


# ----------------------------------------------------------------------------------
# Pure-JAX reference (XLA, f32) of the PyTorch forward, NCHW in / NCHW out.
# ----------------------------------------------------------------------------------
def reference_nchw(x_nchw, w, b, gamma, beta, *, leak=LEAK):
    w_conv = jnp.transpose(jnp.flip(w, axis=(2, 3)), (1, 0, 2, 3))   # OIHW
    y = lax.conv_general_dilated(
        x_nchw, w_conv, window_strides=(1, 1),
        padding=[(K - 1 - PAD, K - 1 - PAD)] * 2,
        dimension_numbers=("NCHW", "OIHW", "NCHW"))
    y = y + b[None, :, None, None]
    y = jnp.where(y > 0, y, leak * y)            # dropout = identity, leaky relu
    mean = jnp.mean(y, axis=(0, 2, 3), keepdims=True)
    var = jnp.mean((y - mean) ** 2, axis=(0, 2, 3), keepdims=True)
    y = (y - mean) * lax.rsqrt(var + EPS)
    return y * gamma[None, :, None, None] + beta[None, :, None, None]


if __name__ == "__main__":
    N, Cin, Cout, H, W = 2, 4, 8, 16, 16

    key = jax.random.PRNGKey(0)
    kx, kw, kb, kg, kbe = jax.random.split(key, 5)
    x_nchw = jax.random.normal(kx, (N, Cin, H, W), dtype=jnp.float32)
    w = jax.random.normal(kw, (Cin, Cout, K, K), dtype=jnp.float32) * 0.1
    b = jax.random.normal(kb, (Cout,), dtype=jnp.float32) * 0.1
    gamma = 1.0 + 0.1 * jax.random.normal(kg, (Cout,), dtype=jnp.float32)
    beta = 0.1 * jax.random.normal(kbe, (Cout,), dtype=jnp.float32)

    # Weight-dependent slabs are precomputed once and reused across calls.
    prepared = prepare_weights(w, b, W)
    out_nchw = decoding_block(x_nchw, w, b, gamma, beta, prepared=prepared)
    out_nchw = jax.block_until_ready(out_nchw)

    ref = reference_nchw(x_nchw, w, b, gamma, beta)
    assert out_nchw.shape == (N, Cout, H, W)
    err = float(jnp.max(jnp.abs(out_nchw - ref)))
    # bf16 MXU inputs + bf16 pre-BN intermediate with f32 accumulation/epilogue -> ~1e-2 abs.
    assert jnp.allclose(out_nchw, ref, rtol=2e-2, atol=2e-2), err

    print("KERNEL_OK")
</pallas_src>

<mosaic_0001>
module attributes {stable_mosaic.version = 11 : i64} {
  func.func @conv_act_kernel(%arg0: i32, %arg1: memref<16x512xbf16, #tpu.memory_space<vmem>>, %arg2: memref<512x128xbf16, #tpu.memory_space<vmem>>, %arg3: memref<1x128xf32, #tpu.memory_space<vmem>>, %arg4: memref<16x128xbf16, #tpu.memory_space<vmem>>, %arg5: memref<1x1x128xf32, #tpu.memory_space<vmem>>, %arg6: memref<1x1x128xf32, #tpu.memory_space<vmem>>) attributes {dimension_semantics = [#tpu.dimension_semantics<parallel>], iteration_bounds = array<i64: 2>, scalar_prefetch = 0 : i64, scratch_operands = 0 : i64, tpu.core_type = #tpu.core_type<tc>, window_params = [{transform_indices = @transform_0, window_bounds = array<i64: 16, 512>}, {pipeline_mode = #tpu.pipeline_mode<synchronous>, transform_indices = @transform_1, window_bounds = array<i64: 512, 128>}, {pipeline_mode = #tpu.pipeline_mode<synchronous>, transform_indices = @transform_2, window_bounds = array<i64: 1, 128>}, {transform_indices = @transform_3, window_bounds = array<i64: 16, 128>}, {transform_indices = @transform_4, window_bounds = array<i64: 1, 1, 128>}, {transform_indices = @transform_5, window_bounds = array<i64: 1, 1, 128>}]} {
    %c0 = arith.constant 0 : index
    %c0_0 = arith.constant 0 : index
    %0 = vector.load %arg1[%c0, %c0_0] : memref<16x512xbf16, #tpu.memory_space<vmem>>, vector<16x512xbf16>
    %c0_1 = arith.constant 0 : index
    %c0_2 = arith.constant 0 : index
    %1 = vector.load %arg2[%c0_1, %c0_2] : memref<512x128xbf16, #tpu.memory_space<vmem>>, vector<512x128xbf16>
    %cst = arith.constant dense<0.000000e+00> : vector<16x128xf32>
    %2 = tpu.matmul %0, %1, %cst {dimension_numbers = #tpu.dot_dimension_numbers<[1], [0], [0], [1], [0, 0, 1, 1], [], []>} : vector<16x512xbf16>, vector<512x128xbf16>, vector<16x128xf32> -> vector<16x128xf32>
    %c0_3 = arith.constant 0 : index
    %c0_4 = arith.constant 0 : index
    %3 = vector.load %arg3[%c0_3, %c0_4] : memref<1x128xf32, #tpu.memory_space<vmem>>, vector<1x128xf32>
    %4 = vector.broadcast %3 : vector<1x128xf32> to vector<16x128xf32>
    %5 = arith.addf %2, %4 : vector<16x128xf32>
    %cst_5 = arith.constant 0.000000e+00 : f32
    %6 = vector.broadcast %cst_5 : f32 to vector<16x128xf32>
    %7 = arith.cmpf ogt, %5, %6 : vector<16x128xf32>
    %cst_6 = arith.constant 1.000000e-01 : f32
    %8 = vector.broadcast %cst_6 : f32 to vector<16x128xf32>
    %9 = arith.mulf %8, %5 : vector<16x128xf32>
    %10 = arith.select %7, %5, %9 : vector<16x128xi1>, vector<16x128xf32>
    %11 = arith.truncf %10 : vector<16x128xf32> to vector<16x128xbf16>
    %c0_7 = arith.constant 0 : index
    %c0_8 = arith.constant 0 : index
    %12 = vector.load %arg4[%c0_7, %c0_8] : memref<16x128xbf16, #tpu.memory_space<vmem>>, vector<16x128xbf16>
    tpu.vector_store %arg4[%c0_7, %c0_8], %11 {strides = array<i32>} : memref<16x128xbf16, #tpu.memory_space<vmem>>, vector<16x128xbf16>,
    %cst_9 = arith.constant dense<0.000000e+00> : vector<128xf32>
    %13 = vector.multi_reduction <add>, %10, %cst_9 [0] : vector<16x128xf32> to vector<128xf32>
    %14 = vector.shape_cast %13 : vector<128xf32> to vector<1x1x128xf32>
    %c0_10 = arith.constant 0 : index
    %c0_11 = arith.constant 0 : index
    %c0_12 = arith.constant 0 : index
    %15 = vector.load %arg5[%c0_10, %c0_11, %c0_12] : memref<1x1x128xf32, #tpu.memory_space<vmem>>, vector<1x1x128xf32>
    tpu.vector_store %arg5[%c0_10, %c0_11, %c0_12], %14 {strides = array<i32>} : memref<1x1x128xf32, #tpu.memory_space<vmem>>, vector<1x1x128xf32>,
    %16 = arith.mulf %10, %10 : vector<16x128xf32>
    %cst_13 = arith.constant dense<0.000000e+00> : vector<128xf32>
    %17 = vector.multi_reduction <add>, %16, %cst_13 [0] : vector<16x128xf32> to vector<128xf32>
    %18 = vector.shape_cast %17 : vector<128xf32> to vector<1x1x128xf32>
    %c0_14 = arith.constant 0 : index
    %c0_15 = arith.constant 0 : index
    %c0_16 = arith.constant 0 : index
    %19 = vector.load %arg6[%c0_14, %c0_15, %c0_16] : memref<1x1x128xf32, #tpu.memory_space<vmem>>, vector<1x1x128xf32>
    tpu.vector_store %arg6[%c0_14, %c0_15, %c0_16], %18 {strides = array<i32>} : memref<1x1x128xf32, #tpu.memory_space<vmem>>, vector<1x1x128xf32>,
    return
  }
  func.func @transform_0(%arg0: i32) -> (i32, i32) {
    %c0_i32 = arith.constant 0 : i32
    %c0_i32_0 = arith.constant 0 : i32
    return %arg0, %c0_i32 : i32, i32
  }
  func.func @transform_1(%arg0: i32) -> (i32, i32) {
    %c0_i32 = arith.constant 0 : i32
    %c0_i32_0 = arith.constant 0 : i32
    %c0_i32_1 = arith.constant 0 : i32
    return %c0_i32, %c0_i32_0 : i32, i32
  }
  func.func @transform_2(%arg0: i32) -> (i32, i32) {
    %c0_i32 = arith.constant 0 : i32
    %c0_i32_0 = arith.constant 0 : i32
    %c0_i32_1 = arith.constant 0 : i32
    return %c0_i32, %c0_i32_0 : i32, i32
  }
  func.func @transform_3(%arg0: i32) -> (i32, i32) {
    %c0_i32 = arith.constant 0 : i32
    %c0_i32_0 = arith.constant 0 : i32
    return %arg0, %c0_i32 : i32, i32
  }
  func.func @transform_4(%arg0: i32) -> (i32, i32, i32) {
    %c0_i32 = arith.constant 0 : i32
    %c0_i32_0 = arith.constant 0 : i32
    %c0_i32_1 = arith.constant 0 : i32
    return %arg0, %c0_i32, %c0_i32_0 : i32, i32, i32
  }
  func.func @transform_5(%arg0: i32) -> (i32, i32, i32) {
    %c0_i32 = arith.constant 0 : i32
    %c0_i32_0 = arith.constant 0 : i32
    %c0_i32_1 = arith.constant 0 : i32
    return %arg0, %c0_i32, %c0_i32_0 : i32, i32, i32
  }
}

</mosaic_0001>

<bundles_post_ra>
// kernel: tpu_custom_call.1
= control target key start
LH: loop header
LB: loop body
LE: loop exit
PB: predicated region body
PF: predicated region fallthrough
CT: control target
= control target key end

     0   :  { %11 = vsyncpa [#allocation3], 0  ;;  %s1602_s0 = inlined_call_operand.hbm [shape: bf16[32,512], index: 0, kind: input, shape index: {}]   ;;  %s1603_s1 = inlined_call_operand.hbm [shape: bf16[512,128], index: 1, kind: input, shape index: {}]   ;;  %s1604_s2 = inlined_call_operand.vmem [shape: f32[1,128], index: 2, kind: input, shape index: {}]   ;;  %s1605_s3 = inlined_call_operand.hbm [shape: bf16[32,128], index: 3, kind: output, shape index: {0}]   ;;  %s1606_s4 = inlined_call_operand.hbm [shape: f32[2,1,128], index: 4, kind: output, shape index: {1}]   ;;  %s1607_s5 = inlined_call_operand.hbm [shape: f32[2,1,128], index: 5, kind: output, shape index: {2}]  }
   0x1   :  { %13 = vsyncpa [#allocation3 + $0x1], 0 }
   0x2   :  { %14 = vsyncpa [#allocation6], 0 }
   0x3   :  { %15 = vsyncpa [#allocation4], 0 }
   0x4   :  { %17 = vsyncpa [#allocation4 + $0x1], 0 }
   0x5   :  { %18 = vsyncpa [#allocation9], 0 }
   0x6   :  { %20 = vsyncpa [#allocation9 + $0x1], 0  ;;  %s1319_s18 = smov 0   ;;  %s1321_s19 = smov 0  }
   0x7   :  { %s1323_s20 = smov 0   ;;  %s1325_s21 = smov 0  }
   0x8 LB: > { %s1340_s22 = sadd.s32 4294967295, %s1276_s21   ;;  %s865_s23 = sadd.s32 4294967294, %s1276_s21   ;;  %s1276_s21 = sphi %s1325_s21, %s1627_s21   ;;  %s1272_s20 = sphi %s1323_s20, %s1626_s20   ;;  %s1268_s19 = sphi %s1321_s19, %s1625_s19   ;;  %s1264_s18 = sphi %s1319_s18, %s1624_s18  }
   0x9   : > { %p46_p0 = scmp.ne.s32.totalorder %s1268_s19, %s1264_s18  ;;  %p1608_p1 = scmp.eq.s32.totalorder %s1340_s22, 0 }
   0xa   : > { %p118_p3 = scmp.eq.s32.totalorder %s865_s23, 1  ;;  %p866_p5 = scmp.ge.s32.totalorder %s1276_s21, 1 }
   0xb   : > { %p1351_p4 = por %p1608_p1, %p46_p0  ;;  %p177_p7 = scmp.lt.s32.totalorder %s1276_s21, 3 }
   0xc   : > { %p1356_p6 = por %p118_p3, %p46_p0  ;;  %s1278_s27 = smov [#allocation5]  }
   0xd   : > { %s1611_s24 = scalar_select %p1351_p4, 1, 0 }
   0xe   : > { %s1612_s25 = scalar_select %p1356_p6, 1, 0 }
   0xf   : > { %p1361_p8 = pnand %p866_p5, %p177_p7  ;;  %s189_s28 = sshll.u32 %s1278_s27, 4  ;;  %s1365_s28 = int_to_ptr.vmem [resolvable:$true] %s189_s28 }
  0x10   : > { %s1377_s30 = sadd.s32 1, %s1276_s21   ;;  %s33_s6 = sadd.s32 1, %s1272_s20 }
  0x11   : > { %s1613_s26 = scalar_select %p1361_p8, 1, 0 }
  0x12   : > { %p989_p9 = pneg %p1361_p8  ;;  %s30_s7 = ssub.s32 %s1276_s21, %s1377_s30 }
  0x13   : > { %s1088_s10 = scalar_lea.hbm %s1603_s1, 4096 }
  0x14   : > { %p1372_p11 = pnand %p989_p9, %p1608_p1  ;;  %p1089_p12 = scmp.ne.s32.totalorder %s1603_s1, %s1088_s10 }
  0x15   : > { %p1095_p5 = scmp.lt.u32.totalorder %s1088_s10, %s1603_s1 }
  0x16   : > { %p1090_p13 = pneg %p1372_p11 }
  0x18   : > { %p1091_p0 = pnand %p1090_p13, %p1089_p12 }
  0x1a   : > { %p1092_p3 = pneg %p1091_p0 }
  0x1c   : > { %p1097_p7 = pnand %p1095_p5, %p1092_p3 }
  0x1e   : > { %1100 = shalt.err (!%p1097_p7)
}
  0x1f   : > { %s1101_s15 = scalar_lea.vmem %s1365_s28, 4096  ;;  %p1109_p2 = scmp.lt.s32.totalorder %s1365_s28, %s1365_s28 }
  0x20   : > { %p1102_p9 = scmp.ne.s32.totalorder %s1365_s28, %s1101_s15  ;;  %p1110_p6 = scmp.lt.s32.totalorder %s1101_s15, %s1101_s15 }
  0x22   : > { %p1104_p10 = pnand %p1102_p9, %p1090_p13  ;;  %p1111_p4 = por %p1110_p6, %p1109_p2 }
  0x24   : > { %p1105_p1 = pneg %p1104_p10 }
  0x26   : > { %p1112_p8 = pnand %p1111_p4, %p1105_p1 }
  0x28   : > { %1115 = shalt.err (!%p1112_p8)
}
  0x29   : > { %s1279_s16 = smov 64   ;;  %s1280_s17 = smov 4  }
  0x2a   : > { %992 = dma.hbm_to_vmem [thread:$0]  (!%p1372_p11), %s1603_s1, 4096, %s1365_s28, [#allocation6], %s1279_s16, %s1279_s16, %s1280_s17  }
  0x2b   : > { %p31_p2 = scmp.eq.s32.totalorder %s30_s7, 0  ;;  %p40_p1 = scmp.ne.s32.totalorder %s1272_s20, %s1268_s19 }
  0x2c   : > { %p41_p4 = scmp.eq.s32.totalorder %s1276_s21, 0  ;;  %p1008_p6 = scmp.lt.s32.totalorder %s1276_s21, 2 }
  0x2d   : > { %s1408_s9 = scalar_select %p31_p2, %s1272_s20, %s33_s6  }
  0x2e   : > { %p42_p8 = por %p41_p4, %p40_p1  ;;  %p1615_p10 = scmp.eq.s32.totalorder %s1340_s22, 1 }
  0x2f   : > { %s206_s11 = sand.u32 1, %s1272_s20   ;;  %s924_s12 = sshll.u32 %s1276_s21, 9 }
  0x30   : > { %p1412_p12 = por %p1615_p10, %p40_p1  ;;  %s869_s13 = sshll.u32 %s206_s11, 5 }
  0x31   : > { %s1421_s15 = scalar_lea.hbm %s1602_s0, %s924_s12  ;;  %s210_s28 = scalar_lea.vmem [#allocation2], %s869_s13 }
  0x32   : > { %s218_s6 = sshll.u32 %s210_s28, 4  ;;  %p1423_p11 = pnand %p1008_p6, %p42_p8  ;;  %s1427_s6 = int_to_ptr.vmem [resolvable:$true] %s218_s6 }
  0x33   : > { %s1429_s16 = scalar_lea.sflag [#allocation3], %s206_s11  ;;  %s1116_s17 = scalar_lea.hbm %s1421_s15, 512 }
  0x34   : > { %p1117_p13 = scmp.ne.s32.totalorder %s1421_s15, %s1116_s17  ;;  %p1118_p0 = pneg %p1423_p11 }
  0x35   : > { %s1121_s12 = scalar_lea.hbm %s1602_s0, 1024  ;;  %p1122_p7 = scmp.lt.u32.totalorder %s1421_s15, %s1602_s0 }
  0x36   : > { %p1119_p3 = pnand %p1118_p0, %p1117_p13  ;;  %p1123_p9 = scmp.lt.u32.totalorder %s1121_s12, %s1116_s17 }
  0x37   : > { %p1125_p1 = scmp.lt.u32.totalorder %s1116_s17, %s1421_s15 }
  0x38   : > { %p1120_p5 = pneg %p1119_p3  ;;  %p1124_p2 = por %p1123_p9, %p1122_p7 }
  0x3a   : > { %p1126_p4 = por %p1125_p1, %p1124_p2 }
  0x3c   : > { %p1127_p6 = pnand %p1126_p4, %p1120_p5 }
  0x3e   : > { %1130 = shalt.err (!%p1127_p6)
}
  0x3f   : > { %s1131_s11 = scalar_lea.vmem %s1427_s6, 512  ;;  %s1281_s14 = smov [#allocation2]  }
  0x40   : > { %p1132_p8 = scmp.ne.s32.totalorder %s1427_s6, %s1131_s11  ;;  %s1136_s28 = sshll.u32 %s1281_s14, 4  ;;  %s1137_s28 = int_to_ptr.vmem [resolvable:$false] %s1136_s28 }
  0x41   : > { %s1138_s27 = scalar_lea.vmem %s1137_s28, 1024  ;;  %p1139_p3 = scmp.lt.s32.totalorder %s1427_s6, %s1137_s28 }
  0x42   : > { %p1134_p10 = pnand %p1132_p8, %p1118_p0  ;;  %p1140_p7 = scmp.lt.s32.totalorder %s1138_s27, %s1131_s11 }
  0x44   : > { %p1135_p13 = pneg %p1134_p10  ;;  %p1141_p9 = por %p1140_p7, %p1139_p3 }
  0x46   : > { %p1142_p2 = pnand %p1141_p9, %p1135_p13 }
  0x48   : > { %1145 = shalt.err (!%p1142_p2)
}
  0x49   : > { %s1282_s17 = smov 256   ;;  %s1283_s8 = smov 16  }
  0x4a   : > { %996 = dma.hbm_to_vmem [thread:$0]  (!%p1423_p11), %s1421_s15, 512, %s1427_s6, %s1429_s16, %s1282_s17, %s1282_s17, %s1283_s8  }
  0x4b   : > { %p1618_p0 = scmp.ne.s32.totalorder %s1613_s26, 0 }
  0x4c   : > { %s1460_s12 = sand.u32 (!%p1618_p0), 1, %s1268_s19   ;;  %p1619_p5 = scmp.ne.s32.totalorder (!%p1618_p0), %s1611_s24, 0 }
  0x4d   : > { %230 = sbr.rel (%p1618_p0) target bundleno = 412 (0x19c), region = 32  ;;  %s874_s13 = sshll.u32 (!%p1618_p0), %s1460_s12, 5 }
  0x4e   : > { %s233_s29 = scalar_lea.sflag (!%p1618_p0), [#allocation3], %s1460_s12  ;;  %s1464_s11 = scalar_lea.vmem (!%p1618_p0), [#allocation2], %s874_s13 }
  0x54   : > { %1247 = dma.done.wait (%p1619_p5), %s233_s29, 512  }
  0x55   : > { %1249 = vsyncadd (%p1619_p5), %s233_s29, 4294966784  ;;  %p1620_p11 = scmp.eq.s32.totalorder %s1340_s22, 0 }
  0x57   : > { %1251 = dma.done.wait (%p1620_p11), [#allocation6], 4096   ;;  %p1621_p1 = pmov %p1620_p11 }
  0x58   : > { %v1050_v0 = vld [vmem:[#allocation5 + $0x40] sm:$0xff]   ;;  %v1054_v4 = vld [vmem:[#allocation5 + $0x48] sm:$0xff]   ;;  %v1058_v8 = vld [vmem:[#allocation5 + $0x50] sm:$0xff]   ;;  %s876_s15 = sshll.u32 %s1460_s12, 3  ;;  %s927_s6 = sshll.u32 %s1340_s22, 7 }
  0x59   : > { %1253 = vsyncadd (%p1621_p1), [#allocation6], 4294963200  ;;  %v1051_v1 = vld [vmem:[#allocation5 + $0xc0] sm:$0xff]   ;;  %933 = vmatprep.subr.bf16.mxu0 %v1050_v0  ;;  %v1055_v5 = vld [vmem:[#allocation5 + $0xc8] sm:$0xff]   ;;  %s262_s7 = scalar_lea.vmem [#allocation7], %s876_s15  ;;  %s1486_s27 = scalar_lea.hbm %s1605_s3, %s927_s6 }
  0x5a   : > { %v1052_v2 = vld [vmem:[#allocation5] sm:$0xff]   ;;  %955 = vmatprep.subr.bf16.mxu1 %v1051_v1  ;;  %v1056_v6 = vld [vmem:[#allocation5 + $0x8] sm:$0xff]   ;;  %v1059_v9 = vld [vmem:[#allocation5 + $0xd0] sm:$0xff]   ;;  %s703_s16 = sshll.u32 %s262_s7, 4  ;;  %s682_s17 = scalar_lea.sflag [#allocation4], %s1460_s12  ;;  %s1488_s16 = int_to_ptr.vmem [resolvable:$true] %s703_s16 }
  0x5b   : > { %v1053_v3 = vld [vmem:[#allocation5 + $0x80] sm:$0xff]   ;;  %934 = vmatpush3.bf16.msra.mxu0 %v1052_v2  ;;  %v1057_v7 = vld [vmem:[#allocation5 + $0x88] sm:$0xff]   ;;  %v1060_v10 = vld [vmem:[#allocation5 + $0x10] sm:$0xff]   ;;  %s1146_s8 = scalar_lea.vmem %s1488_s16, 128  ;;  %s1284_s13 = smov [#allocation7]  }
  0x5c   : > { %956 = vmatpush3.bf16.msra.mxu1 %v1053_v3  ;;  %935 = vmatprep.subr.bf16.mxu0 %v1054_v4  ;;  %v1061_v11 = vld [vmem:[#allocation5 + $0x90] sm:$0xff]   ;;  %v1062_v12 = vld [vmem:[#allocation5 + $0x58] sm:$0xff]   ;;  %v1066_v16 = vld [vmem:[#allocation5 + $0x60] sm:$0xff]   ;;  %p1147_p4 = scmp.ne.s32.totalorder %s1488_s16, %s1146_s8  ;;  %s1150_s29 = sshll.u32 %s1284_s13, 4  ;;  %s1151_s29 = int_to_ptr.vmem [resolvable:$false] %s1150_s29 }
  0x5d   : > { %957 = vmatprep.subr.bf16.mxu1 %v1055_v5  ;;  %v1063_v13 = vld [vmem:[#allocation5 + $0xd8] sm:$0xff]   ;;  %v1067_v17 = vld [vmem:[#allocation5 + $0xe0] sm:$0xff]   ;;  %v1070_v20 = vld [vmem:[#allocation5 + $0x68] sm:$0xff]   ;;  %p1153_p10 = scmp.lt.s32.totalorder %s1488_s16, %s1151_s29 }
  0x5e   : > { %v1064_v14 = vld [vmem:[#allocation5 + $0x18] sm:$0xff]   ;;  %v1068_v18 = vld [vmem:[#allocation5 + $0x20] sm:$0xff]   ;;  %v1071_v21 = vld [vmem:[#allocation5 + $0xe8] sm:$0xff]   ;;  %p1148_p6 = pnand %p1147_p4, %p1412_p12 }
  0x5f   : > { %936 = vmatpush3.bf16.msra.mxu0 %v1056_v6  ;;  %v1065_v15 = vld [vmem:[#allocation5 + $0x98] sm:$0xff]   ;;  %v1069_v19 = vld [vmem:[#allocation5 + $0xa0] sm:$0xff]   ;;  %v1072_v22 = vld [vmem:[#allocation5 + $0x28] sm:$0xff]  }
  0x60   : > { %958 = vmatpush3.bf16.msra.mxu1 %v1057_v7  ;;  %937 = vmatprep.subr.bf16.mxu0 %v1058_v8  ;;  %v1073_v23 = vld [vmem:[#allocation5 + $0xa8] sm:$0xff]   ;;  %v1074_v24 = vld [vmem:[#allocation5 + $0x70] sm:$0xff]   ;;  %v1078_v28 = vld [vmem:[#allocation5 + $0x78] sm:$0xff]   ;;  %p1149_p8 = pneg %p1148_p6 }
  0x61   : > { %959 = vmatprep.subr.bf16.mxu1 %v1059_v9  ;;  %v1075_v25 = vld [vmem:[#allocation5 + $0xf0] sm:$0xff]   ;;  %v1079_v29 = vld [vmem:[#allocation5 + $0xf8] sm:$0xff]   ;;  %v877_v38 = vld [vmem:[%s1604_s2] ss:$0 sm:$0xff] }
  0x62   : > { %v1076_v26 = vld [vmem:[#allocation5 + $0x30] sm:$0xff]   ;;  %v1080_v30 = vld [vmem:[#allocation5 + $0x38] sm:$0xff]  }
  0x63   : > { %938 = vmatpush3.bf16.msra.mxu0 %v1060_v10  ;;  %v1077_v27 = vld [vmem:[#allocation5 + $0xb0] sm:$0xff]   ;;  %v1081_v31 = vld [vmem:[#allocation5 + $0xb8] sm:$0xff]  }
  0x64   : > { %960 = vmatpush3.bf16.msra.mxu1 %v1061_v11  ;;  %939 = vmatprep.subr.bf16.mxu0 %v1062_v12  ;;  %v1082_v32 = vld [vmem:[%s1464_s11] ss:$16 sps:$4 sm:$0xff]   ;;  %v1084_v33 = vld [vmem:[%s1464_s11 + $0x4] ss:$16 sps:$4 sm:$0xff]   ;;  %v1085_v34 = vld [vmem:[%s1464_s11 + $0x8] ss:$16 sps:$4 sm:$0xff]  }
  0x65   : > { %961 = vmatprep.subr.bf16.mxu1 %v1063_v13  ;;  %v1087_v35 = vld [vmem:[%s1464_s11 + $0xc] ss:$16 sps:$4 sm:$0xff]   ;;  %597 = vmatprep.mubr.bf16.mxu0 %v1084_v33  ;;  %s1152_s11 = scalar_lea.vmem %s1151_s29, 256 }
  0x66   : > { %638 = vmatprep.mubr.bf16.mxu1 %v1087_v35  ;;  %p1154_p13 = scmp.lt.s32.totalorder %s1152_s11, %s1146_s8 }
  0x67   : > { %940 = vmatpush3.bf16.msra.mxu0 %v1064_v14 }
  0x68   : > { %962 = vmatpush3.bf16.msra.mxu1 %v1065_v15  ;;  %941 = vmatprep.subr.bf16.mxu0 %v1066_v16  ;;  %p1155_p3 = por %p1154_p13, %p1153_p10 }
  0x69   : > { %963 = vmatprep.subr.bf16.mxu1 %v1067_v17 }
  0x6a   : > { %p1156_p7 = pnand %p1155_p3, %p1149_p8 }
  0x6b   : > { %942 = vmatpush3.bf16.msra.mxu0 %v1068_v18 }
  0x6c   : > { %964 = vmatpush3.bf16.msra.mxu1 %v1069_v19  ;;  %943 = vmatprep.subr.bf16.mxu0 %v1070_v20 }
  0x6d   : > { %965 = vmatprep.subr.bf16.mxu1 %v1071_v21 }
  0x6f   : > { %944 = vmatpush3.bf16.msra.mxu0 %v1072_v22 }
  0x70   : > { %966 = vmatpush3.bf16.msra.mxu1 %v1073_v23  ;;  %945 = vmatprep.subr.bf16.mxu0 %v1074_v24 }
  0x71   : > { %967 = vmatprep.subr.bf16.mxu1 %v1075_v25 }
  0x73   : > { %946 = vmatpush3.bf16.msra.mxu0 %v1076_v26 }
  0x74   : > { %968 = vmatpush3.bf16.msra.mxu1 %v1077_v27  ;;  %947 = vmatprep.subr.bf16.mxu0 %v1078_v28 }
  0x75   : > { %969 = vmatprep.subr.bf16.mxu1 %v1079_v29 }
  0x77   : > { %948 = vmatpush3.bf16.msra.mxu0 %v1080_v30 }
  0x78   : > { %970 = vmatpush3.bf16.msra.mxu1 %v1081_v31 }
  0x7a   : > { %598 = vmatmul.mubr.bf16.vlgmr.msra.gmra.mrb[0].mxu0 %v1082_v32 }
  0x7b   : > { %639 = vmatmul.mubr.bf16.vlgmr.msra.gmra.mrb[0].mxu1 %v1085_v34 }
 0x14d   : > { %v949_v36 = vpop.f32.mrb[0].mxu0 }
 0x14e   : > { %v971_v37 = vpop.f32.mrb[0].mxu1  ;;  %v950_v39 = vpop.f32.mrb[1].mxu0 }
 0x14f   : > { %v951_v40 = vadd.f32 %v950_v39, %v949_v36  ;;  %v972_v41 = vpop.f32.mrb[1].mxu1  ;;  %v952_v42 = vpop.f32.mrb[2].mxu0 }
 0x150   : > { %v973_v43 = vadd.f32 %v972_v41, %v971_v37  ;;  %v974_v44 = vpop.f32.mrb[2].mxu1  ;;  %v953_v45 = vpop.f32.mrb[3].mxu0 }
 0x151   : > { %v600_v46 = vadd.f32 %v951_v40, %v877_v38  ;;  %v954_v47 = vadd.f32 %v953_v45, %v952_v42  ;;  %v975_v48 = vpop.f32.mrb[3].mxu1 }
 0x152   : > { %v976_v49 = vadd.f32 %v975_v48, %v974_v44 }
 0x153   : > { %v641_v50 = vadd.f32 %v973_v43, %v600_v46  ;;  %v603_v51 = vadd.f32 %v954_v47, %v877_v38 }
 0x155   : > { %vm647_vm0 = vcmp.gt.f32.partialorder %v641_v50, 0.0  ;;  %v649_v52 = vmul.f32 0.1, %v641_v50  ;;  %v644_v53 = vadd.f32 %v976_v49, %v603_v51 }
 0x157   : > { %v651_v54 = vsel %vm647_vm0, %v641_v50, %v649_v52  ;;  %vm648_vm1 = vcmp.gt.f32.partialorder %v644_v53, 0.0  ;;  %v650_v55 = vmul.f32 0.1, %v644_v53 }
 0x158   : > { %v671_v57 = vmul.f32 %v651_v54, %v651_v54 }
 0x159   : > { %v652_v56 = vsel %vm648_vm1, %v644_v53, %v650_v55 }
 0x15a   : > { %v931_v58 = vpack.c.bf16 %v652_v56, %v651_v54  ;;  %v663_v59 = vadd.f32 %v652_v56, %v651_v54  ;;  %v672_v60 = vmul.f32 %v652_v56, %v652_v56 }
 0x15c   : > { %v664_v61 = vrot.slane %v663_v59, 4  ;;  %v673_v62 = vadd.f32 %v672_v60, %v671_v57  ;;  %932 = vst [vmem:[%s262_s7] sm:$0xff] %v931_v58  }
 0x15d   : > { %1159 = shalt.err (!%p1156_p7)
}
 0x15e   : > { %s1160_s24 = scalar_lea.hbm %s1486_s27, 128  ;;  %s1164_s6 = scalar_lea.hbm %s1605_s3, 256 }
 0x15f   : > { %p1161_p9 = scmp.ne.s32.totalorder %s1486_s27, %s1160_s24  ;;  %p1165_p5 = scmp.lt.u32.totalorder %s1486_s27, %s1605_s3 }
 0x160   : > { %p1166_p11 = scmp.lt.u32.totalorder %s1164_s6, %s1160_s24  ;;  %p1168_p4 = scmp.lt.u32.totalorder %s1160_s24, %s1486_s27 }
 0x161   : > { %p1162_p2 = pnand %p1161_p9, %p1412_p12 }
 0x162   : > { %p1167_p1 = por %p1166_p11, %p1165_p5 }
 0x163   : > { %p1163_p0 = pneg %p1162_p2 }
 0x164   : > { %p1169_p6 = por %p1168_p4, %p1167_p1 }
 0x166   : > { %p1170_p8 = pnand %p1169_p6, %p1163_p0 }
 0x168   : > { %1173 = shalt.err (!%p1170_p8)
}
 0x169   : > { %s1285_s28 = smov 64   ;;  %s1286_s8 = smov 4   ;;  %v665_v63 = vadd.f32 %v664_v61, %v663_v59  ;;  %v674_v0 = vrot.slane %v673_v62, 4 }
 0x16a   : > { %983 = dma.vmem_to_hbm [thread:$0]  (%p1412_p12), %s1488_s16, 128, %s1486_s27, %s682_s17, %s1285_s28, %s1285_s28, %s1286_s8  }
 0x16b   : > { %v666_v1 = vrot.slane %v665_v63, 2  ;;  %v675_v2 = vadd.f32 %v674_v0, %v673_v62  ;;  %s686_s13 = sand.u32 1, %s1340_s22   ;;  %s919_s29 = sshll.u32 %s1340_s22, 4 }
 0x16c   : > { %s268_s11 = scalar_lea.vmem [#allocation8], %s1460_s12  ;;  %s274_s26 = scalar_lea.vmem [#allocation10], %s1460_s12 }
 0x16d   : > { %v676_v3 = vrot.slane %v675_v2, 2  ;;  %v667_v4 = vadd.f32 %v666_v1, %v665_v63  ;;  %s719_s24 = sshll.u32 %s268_s11, 4  ;;  %s732_s15 = sshll.u32 %s274_s26, 4  ;;  %s1525_s24 = int_to_ptr.vmem [resolvable:$true] %s719_s24  ;;  %s1532_s15 = int_to_ptr.vmem [resolvable:$true] %s732_s15 }
 0x16e   : > { %s1523_s16 = scalar_lea.hbm %s1606_s4, %s919_s29  ;;  %s1530_s17 = scalar_lea.hbm %s1607_s5, %s919_s29 }
 0x16f   : > { %v668_v5 = vrot.slane %v667_v4, 1  ;;  %v677_v6 = vadd.f32 %v676_v3, %v675_v2  ;;  %s1534_s14 = scalar_lea.sflag [#allocation9], %s686_s13  ;;  %s1174_s28 = scalar_lea.vmem %s1525_s24, 16 }
 0x170   : > { %p1175_p10 = scmp.ne.s32.totalorder %s1525_s24, %s1174_s28  ;;  %s1287_s8 = smov [#allocation8]  }
 0x171   : > { %v669_v7 = vadd.f32 %v668_v5, %v667_v4  ;;  %v678_v8 = vrot.slane %v677_v6, 1  ;;  %s1178_s6 = sshll.u32 %s1287_s8, 4  ;;  %s1179_s6 = int_to_ptr.vmem [resolvable:$false] %s1178_s6 }
 0x172   : > { %p1176_p13 = pnand %p1175_p10, %p1412_p12  ;;  %s1180_s7 = scalar_lea.vmem %s1179_s6, 32 }
 0x173   : > { %670 = vst [vmem:[%s268_s11] sm:$0x1] %v669_v7  ;;  %v679_v9 = vadd.f32 %v678_v8, %v677_v6  ;;  %p1181_p7 = scmp.lt.s32.totalorder %s1525_s24, %s1179_s6  ;;  %p1182_p9 = scmp.lt.s32.totalorder %s1180_s7, %s1174_s28 }
 0x174   : > { %p1177_p3 = pneg %p1176_p13 }
 0x175   : > { %p1183_p2 = por %p1182_p9, %p1181_p7 }
 0x177   : > { %p1184_p0 = pnand %p1183_p2, %p1177_p3 }
 0x179   : > { %1187 = shalt.err (!%p1184_p0)
}
 0x17a   : > { %s1188_s13 = scalar_lea.hbm %s1523_s16, 16  ;;  %s1192_s22 = scalar_lea.hbm %s1606_s4, 32 }
 0x17b   : > { %p1189_p5 = scmp.ne.s32.totalorder %s1523_s16, %s1188_s13  ;;  %p1193_p4 = scmp.lt.u32.totalorder %s1523_s16, %s1606_s4 }
 0x17c   : > { %p1194_p6 = scmp.lt.u32.totalorder %s1192_s22, %s1188_s13  ;;  %p1196_p10 = scmp.lt.u32.totalorder %s1188_s13, %s1523_s16 }
 0x17d   : > { %p1190_p11 = pnand %p1189_p5, %p1412_p12 }
 0x17e   : > { %p1195_p8 = por %p1194_p6, %p1193_p4 }
 0x17f   : > { %p1191_p1 = pneg %p1190_p11 }
 0x180   : > { %p1197_p13 = por %p1196_p10, %p1195_p8 }
 0x182   : > { %p1198_p3 = pnand %p1197_p13, %p1191_p1 }
 0x184   : > { %1201 = shalt.err (!%p1198_p3)
}
 0x185   : > { %984 = dma.vmem_to_hbm [thread:$0]  (%p1412_p12), %s1525_s24, 16, %s1523_s16, %s1534_s14   ;;  %680 = vst [vmem:[%s274_s26] sm:$0x1] %v679_v9 }
 0x186   : > { %s1202_s28 = scalar_lea.vmem %s1532_s15, 16  ;;  %s1288_s6 = smov [#allocation10]  }
 0x187   : > { %p1203_p7 = scmp.ne.s32.totalorder %s1532_s15, %s1202_s28  ;;  %s1206_s7 = sshll.u32 %s1288_s6, 4  ;;  %s1207_s7 = int_to_ptr.vmem [resolvable:$false] %s1206_s7 }
 0x188   : > { %s1208_s13 = scalar_lea.vmem %s1207_s7, 32  ;;  %p1209_p0 = scmp.lt.s32.totalorder %s1532_s15, %s1207_s7 }
 0x189   : > { %p1204_p9 = pnand %p1203_p7, %p1412_p12  ;;  %p1210_p5 = scmp.lt.s32.totalorder %s1208_s13, %s1202_s28 }
 0x18b   : > { %p1205_p2 = pneg %p1204_p9  ;;  %p1211_p11 = por %p1210_p5, %p1209_p0 }
 0x18d   : > { %p1212_p1 = pnand %p1211_p11, %p1205_p2 }
 0x18f   : > { %1215 = shalt.err (!%p1212_p1)
}
 0x190   : > { %s1216_s12 = scalar_lea.hbm %s1530_s17, 16  ;;  %s1220_s16 = scalar_lea.hbm %s1607_s5, 32 }
 0x191   : > { %p1217_p4 = scmp.ne.s32.totalorder %s1530_s17, %s1216_s12  ;;  %p1221_p10 = scmp.lt.u32.totalorder %s1530_s17, %s1607_s5 }
 0x192   : > { %p1222_p13 = scmp.lt.u32.totalorder %s1220_s16, %s1216_s12  ;;  %p1224_p7 = scmp.lt.u32.totalorder %s1216_s12, %s1530_s17 }
 0x193   : > { %p1218_p6 = pnand %p1217_p4, %p1412_p12 }
 0x194   : > { %p1223_p3 = por %p1222_p13, %p1221_p10 }
 0x195   : > { %p1219_p8 = pneg %p1218_p6 }
 0x196   : > { %p1225_p9 = por %p1224_p7, %p1223_p3 }
 0x198   : > { %p1226_p2 = pnand %p1225_p9, %p1219_p8 }
 0x19a   : > { %1229 = shalt.err (!%p1226_p2)
}
 0x19b   : > { %985 = dma.vmem_to_hbm [thread:$0]  (%p1412_p12), %s1532_s15, 16, %s1530_s17, %s1534_s14  }
 0x19c PF: > { %s744_s22 = sand.u32 1, %s1264_s18   ;;  %p1622_p0 = scmp.ne.s32.totalorder %s1612_s25, 0 }
 0x19d   : > { %p1623_p5 = scmp.ge.s32.totalorder %s1276_s21, 2  ;;  %s745_s27 = scalar_lea.sflag [#allocation4], %s744_s22 }
 0x19f   : > { %p998_p11 = pnand %p1623_p5, %p1622_p0 }
 0x1a1   : > { %1255 = dma.done.wait (!%p998_p11), %s745_s27, 128  }
 0x1a2   : > { %1257 = vsyncadd (!%p998_p11), %s745_s27, 4294967168  ;;  %s753_s8 = sand.u32 1, %s865_s23  }
 0x1a3   : > { %s754_s28 = scalar_lea.sflag [#allocation9], %s753_s8 }
 0x1a4   : > { %1259 = dma.done.wait (!%p998_p11), %s754_s28, 32  }
 0x1a5   : > { %1261 = vsyncadd (!%p998_p11), %s754_s28, 4294967264  ;;  %p23_p12 = scmp.ge.s32.totalorder %s1377_s30, 4   ;;  %s1624_s18 = smov %s1268_s19 }
 0x1a6   : > { %s1625_s19 = smov %s1272_s20  ;;  %s1626_s20 = smov %s1408_s9 }
 0x1a7   : > { %s1627_s21 = smov %s1377_s30  ;;  %25 = sbr.rel (!%p23_p12) target bundleno = 8 (0x8), region = 113 }
 0x1ae   :  { %766 = vsyncpa [#allocation3], 1 }
 0x1af   :  { %768 = vsyncpa [#allocation3 + $0x1], 1 }
 0x1b0   :  { %769 = vsyncpa [#allocation6], 1 }
 0x1b1   :  { %770 = vsyncpa [#allocation4], 1 }
 0x1b2   :  { %772 = vsyncpa [#allocation4 + $0x1], 1 }
 0x1b3   :  { %773 = vsyncpa [#allocation9], 1 }
 0x1b4   :  { %775 = vsyncpa [#allocation9 + $0x1], 1 }

</bundles_post_ra>
